<compile_context>
chip_gen: v6e
topology: v6e:2x2x1
jax: 0.10.0
libtpu: 0.0.40
codegen_flags: <defaults>
</compile_context>

<pallas_src>
import jax
import jax.numpy as jnp
from jax.experimental import pallas as pl
from jax.experimental.pallas import tpu as pltpu

_LANES = 128                              # TPU lane width
_MAX_LANE_BLOCK = 2048                    # cap on lane-dense slab width
_TARGET_BLOCK_BYTES = 4 * 1024 * 1024     # ~4 MiB f32 tiles -> ~86% of HBM roofline


def _gelu_kernel(x_ref, o_ref):
    # x_ref / o_ref: (tm, lane_block) tile resident in VMEM.
    # Math in f32 regardless of storage dtype (matches the PyTorch module numerics and
    # works on v5e, which has no bf16 VPU/EUP path). tanh lands on the EUP slot.
    x = x_ref[...].astype(jnp.float32)
    c = jnp.float32(0.7978845608028654)  # sqrt(2 / pi)
    y = 0.5 * x * (1.0 + jnp.tanh(c * (x + 0.044715 * (x * x * x))))
    o_ref[...] = y.astype(o_ref.dtype)


def _round_up(a, b):
    return ((a + b - 1) // b) * b


def _round_down(a, b):
    return (a // b) * b


def _pick_lane_block(total):
    """Largest multiple of 128 (<= cap) that exactly divides `total`, else None."""
    if total % _LANES != 0:
        return None
    lb = min(_MAX_LANE_BLOCK, total)
    lb = _round_down(lb, _LANES)
    while lb >= _LANES:
        if total % lb == 0:
            return lb
        lb -= _LANES
    return None


def _pick_tm(rows, lane_block):
    """Row-tile size: ~4 MiB f32 blocks, 16-aligned, >= 2 grid steps for medium inputs."""
    target_rows = max(16, _round_down(_TARGET_BLOCK_BYTES // (lane_block * 4), 16))
    if rows <= 32:
        # Tiny input: a single full-extent block (legal for any rows); pipelining irrelevant.
        return rows
    # Cap tm so grid = cdiv(rows, tm) >= 2: keeps double-buffered DMA overlap alive and
    # lets the "parallel" axis shard across v7x's two TensorCores.
    tm = min(target_rows, _round_up(pl.cdiv(rows, 2), 16))
    return max(16, tm)


def _gelu_2d(x2d, rows, lane_block, out_dtype):
    tm = _pick_tm(rows, lane_block)
    grid_m = pl.cdiv(rows, tm)  # ragged last block is masked by Pallas (elementwise-safe)

    total = rows * lane_block
    itemsize = jnp.dtype(out_dtype).itemsize
    cost = pl.CostEstimate(
        flops=8 * total,
        transcendentals=total,
        bytes_accessed=2 * total * itemsize,
    )
    # in + out tiles, double-buffered, f32 worst case, plus ~2 MiB headroom.
    vmem_bytes = 4 * tm * lane_block * 4 + (2 << 20)

    return pl.pallas_call(
        _gelu_kernel,
        out_shape=jax.ShapeDtypeStruct((rows, lane_block), out_dtype),
        grid_spec=pltpu.PrefetchScalarGridSpec(
            num_scalar_prefetch=0,
            grid=(grid_m,),
            in_specs=[pl.BlockSpec((tm, lane_block), lambda i: (i, 0))],
            out_specs=pl.BlockSpec((tm, lane_block), lambda i: (i, 0)),
        ),
        compiler_params=pltpu.CompilerParams(
            dimension_semantics=("parallel",),
            vmem_limit_bytes=int(vmem_bytes),
        ),
        cost_estimate=cost,
    )(x2d)


def gelu(x):
    """Tanh-approx GELU of an arbitrary-shaped array via a tiled Pallas TPU kernel."""
    orig_shape = x.shape
    orig_dtype = x.dtype
    total = x.size
    if total == 0:
        return x

    lane_block = _pick_lane_block(total)
    if lane_block is not None:
        # Fast path: lane_block divides the element count exactly -> no padding, no output
        # slice; the fold/unfold are pure reshapes (free in row-major layout).
        rows = total // lane_block
        out2d = _gelu_2d(x.reshape(rows, lane_block), rows, lane_block, orig_dtype)
        return out2d.reshape(orig_shape)

    # Fallback (x.size not a multiple of 128): pad only the sub-row tail (< 128 elements,
    # GELU(0) = 0) and slice it back off afterwards.
    lane_block = _LANES
    padded_total = _round_up(total, lane_block)
    flat = jnp.pad(x.reshape(-1), (0, padded_total - total))
    rows = padded_total // lane_block
    out2d = _gelu_2d(flat.reshape(rows, lane_block), rows, lane_block, orig_dtype)
    return out2d.reshape(-1)[:total].reshape(orig_shape)


if __name__ == "__main__":
    key = jax.random.PRNGKey(0)

    def ref_gelu(x):
        # Plain-JAX reference of the PyTorch module's forward (tanh approximation).
        xf = x.astype(jnp.float32)
        c = jnp.sqrt(jnp.float32(2.0 / jnp.pi))
        y = 0.5 * xf * (1.0 + jnp.tanh(c * (xf + 0.044715 * jnp.power(xf, 3))))
        return y.astype(x.dtype)

    k1, k2, k3 = jax.random.split(key, 3)

    # Toy GPT-2 activation shape: (batch, seq, emb_dim) -- 128-divisible fast path, grid=1.
    x_main = jax.random.normal(k1, (2, 8, 32), dtype=jnp.float32)
    out_main = jax.block_until_ready(gelu(x_main))
    assert out_main.shape == x_main.shape and out_main.dtype == x_main.dtype
    assert jnp.allclose(out_main, ref_gelu(x_main), atol=1e-5, rtol=1e-5), "mismatch (main)"

    # 128-divisible fast path with a multi-step grid (double-buffered, no pad/slice).
    x_big = jax.random.normal(k2, (4, 64, 512), dtype=jnp.float32)
    out_big = jax.block_until_ready(gelu(x_big))
    assert jnp.allclose(out_big, ref_gelu(x_big), atol=1e-5, rtol=1e-5), "mismatch (big)"

    # Awkward size -> small-tail padding fallback.
    x_odd = jax.random.normal(k3, (3, 5, 7), dtype=jnp.float32)
    out_odd = jax.block_until_ready(gelu(x_odd))
    assert out_odd.shape == x_odd.shape
    assert jnp.allclose(out_odd, ref_gelu(x_odd), atol=1e-5, rtol=1e-5), "mismatch (odd)"

    print("KERNEL_OK")
</pallas_src>

<mosaic_0001>
module attributes {stable_mosaic.version = 11 : i64} {
  func.func @_gelu_kernel(%arg0: i32, %arg1: memref<1x512xf32, #tpu.memory_space<vmem>>, %arg2: memref<1x512xf32, #tpu.memory_space<vmem>>) attributes {dimension_semantics = [#tpu.dimension_semantics<parallel>], iteration_bounds = array<i64: 1>, scalar_prefetch = 0 : i64, scratch_operands = 0 : i64, tpu.core_type = #tpu.core_type<tc>, window_params = [{transform_indices = @transform_0, window_bounds = array<i64: 1, 512>}, {transform_indices = @transform_1, window_bounds = array<i64: 1, 512>}]} {
    %c0 = arith.constant 0 : index
    %c0_0 = arith.constant 0 : index
    %0 = vector.load %arg1[%c0, %c0_0] : memref<1x512xf32, #tpu.memory_space<vmem>>, vector<1x512xf32>
    %cst = arith.constant 5.000000e-01 : f32
    %1 = vector.broadcast %cst : f32 to vector<1x512xf32>
    %2 = arith.mulf %1, %0 : vector<1x512xf32>
    %3 = arith.mulf %0, %0 : vector<1x512xf32>
    %4 = arith.mulf %3, %0 : vector<1x512xf32>
    %cst_1 = arith.constant 4.471500e-02 : f32
    %5 = vector.broadcast %cst_1 : f32 to vector<1x512xf32>
    %6 = arith.mulf %5, %4 : vector<1x512xf32>
    %7 = arith.addf %0, %6 : vector<1x512xf32>
    %cst_2 = arith.constant 0.797884583 : f32
    %8 = vector.broadcast %cst_2 : f32 to vector<1x512xf32>
    %9 = arith.mulf %8, %7 : vector<1x512xf32>
    %10 = math.tanh %9 : vector<1x512xf32>
    %cst_3 = arith.constant 1.000000e+00 : f32
    %11 = vector.broadcast %cst_3 : f32 to vector<1x512xf32>
    %12 = arith.addf %11, %10 : vector<1x512xf32>
    %13 = arith.mulf %2, %12 : vector<1x512xf32>
    %c0_4 = arith.constant 0 : index
    %c0_5 = arith.constant 0 : index
    %14 = vector.load %arg2[%c0_4, %c0_5] : memref<1x512xf32, #tpu.memory_space<vmem>>, vector<1x512xf32>
    tpu.vector_store %arg2[%c0_4, %c0_5], %13 {strides = array<i32>} : memref<1x512xf32, #tpu.memory_space<vmem>>, vector<1x512xf32>,
    return
  }
  func.func @transform_0(%arg0: i32) -> (i32, i32) {
    %c0_i32 = arith.constant 0 : i32
    %c0_i32_0 = arith.constant 0 : i32
    return %arg0, %c0_i32 : i32, i32
  }
  func.func @transform_1(%arg0: i32) -> (i32, i32) {
    %c0_i32 = arith.constant 0 : i32
    %c0_i32_0 = arith.constant 0 : i32
    return %arg0, %c0_i32 : i32, i32
  }
}

</mosaic_0001>

<bundles_post_ra>
// kernel: tpu_custom_call.1
= control target key start
LH: loop header
LB: loop body
LE: loop exit
PB: predicated region body
PF: predicated region fallthrough
CT: control target
= control target key end

     0   :  { %6 = vsyncpa [#allocation3], 0  ;;  %s117_s0 = inlined_call_operand.hbm [shape: f32[1,512], index: 0, kind: input, shape index: {}]   ;;  %s118_s1 = inlined_call_operand.hbm [shape: f32[1,512], index: 1, kind: output, shape index: {}]  }
   0x1   :  { %7 = vsyncpa [#allocation4], 0  ;;  %s99_s6 = smov [#allocation2]  }
   0x2   :  { %s14_s7 = sshll.u32 %s99_s6, 4  ;;  %s15_s7 = int_to_ptr.vmem [resolvable:$true] %s14_s7 }
   0x3   :  { %s63_s8 = scalar_lea.vmem %s15_s7, 64  ;;  %p68_p1 = scmp.lt.s32.totalorder %s15_s7, %s15_s7 }
   0x4   :  { %p64_p0 = scmp.ne.s32.totalorder %s15_s7, %s63_s8  ;;  %p69_p2 = scmp.lt.s32.totalorder %s63_s8, %s63_s8 }
   0x6   :  { %p70_p3 = por %p69_p2, %p68_p1 }
   0x8   :  { %p71_p4 = pnand %p70_p3, %p64_p0 }
   0xa   :  { %74 = shalt.err (!%p71_p4)
}
   0xb   :  { %17 = dma.hbm_to_vmem [thread:$0]  %s117_s0, 64, %s15_s7, [#allocation3]  }
   0xc   :  { %95 = dma.done.wait [#allocation3], 64  }
   0xd   :  { %96 = vsyncadd [#allocation3], 4294967232  ;;  %v21_v0 = vld [vmem:[#allocation2] sm:$0xf]  ;;  %v31_v6 = vlaneseq  ;;  %s100_s11 = smov [#allocation5]  }
   0xe   :  { %v23_v1 = vmul.f32 %v21_v0, %v21_v0  ;;  %v22_v7 = vmul.f32 0.5, %v21_v0  ;;  %s42_s12 = sshll.u32 %s100_s11, 4  ;;  %s43_s12 = int_to_ptr.vmem [resolvable:$true] %s42_s12 }
   0xf   :  { %vm33_vm0 = vcmp.lt.s32.totalorder %v31_v6, 512  ;;  %s75_s0 = scalar_lea.vmem %s43_s12, 64  ;;  %p80_p6 = scmp.lt.s32.totalorder %s43_s12, %s43_s12 }
  0x10   :  { %v24_v2 = vmul.f32 %v23_v1, %v21_v0  ;;  %p76_p5 = scmp.ne.s32.totalorder %s43_s12, %s75_s0  ;;  %p81_p7 = scmp.lt.s32.totalorder %s75_s0, %s75_s0 }
  0x12   :  { %v25_v3 = vmul.f32 0.044715, %v24_v2  ;;  %p82_p8 = por %p81_p7, %p80_p6 }
  0x14   :  { %v26_v4 = vadd.f32 %v25_v3, %v21_v0  ;;  %p83_p9 = pnand %p82_p8, %p76_p5 }
  0x16   :  { %v27_v5 = vmul.f32 0.7978846, %v26_v4 }
  0x18   :  { %53 = vtanh.f32 %v27_v5 }
  0x25   :  { %v54_v8 = vpop.eup %53 }
  0x26   :  { %v29_v9 = vadd.f32 1.0, %v54_v8 }
  0x28   :  { %v30_v10 = vmul.f32 %v29_v9, %v22_v7 }
  0x2a   :  { %35 = vst.msk [vmem:[#allocation5] sm:$0xf] %vm33_vm0, %v30_v10 }
  0x2b   :  { %86 = shalt.err (!%p83_p9)
}
  0x2c   :  { %45 = dma.vmem_to_hbm [thread:$0]  %s43_s12, 64, %s118_s1, [#allocation4]  }
  0x2d   :  { %97 = dma.done.wait [#allocation4], 64  }
  0x2e   :  { %98 = vsyncadd [#allocation4], 4294967232 }
  0x2f   :  { %49 = vsyncpa [#allocation3], 1 }
  0x30   :  { %50 = vsyncpa [#allocation4], 1 }

</bundles_post_ra>
